<compile_context>
chip_gen: v7x
topology: tpu7x:2x2x1
jax: 0.10.0
libtpu: 0.0.40
codegen_flags: <defaults>
</compile_context>

<pallas_src>
import jax
import jax.numpy as jnp
from jax import lax
from jax.experimental import pallas as pl
from jax.experimental.pallas import tpu as pltpu


def attention_kernel(st1_ref, cj_ref, mask_ref, w_ref, u_ref, v_ref, out_ref):
    # Per-grid-step shapes:
    #   st1_ref : (1, 1, d)     cj_ref  : (1, L, d)
    #   mask_ref: (1, 1, L)     (int32, nonzero => masked)
    #   w_ref/u_ref: (d, d)     v_ref   : (1, d)
    #   out_ref : (1, 1, L)
    cj = cj_ref[0]                                   # (L, d)  f32
    st1 = st1_ref[0]                                 # (1, d)  f32

    # Hidden-dim projections on the MXU; the (1, d) st_1 projection broadcasts
    # over the L sublanes of the c_j projection (no reshape needed).
    proj_c = jnp.dot(cj, w_ref[...], preferred_element_type=jnp.float32)   # (L, d)
    proj_s = jnp.dot(st1, u_ref[...], preferred_element_type=jnp.float32)  # (1, d)
    inside = jnp.tanh(proj_c + proj_s)                                     # (L, d)

    # Score projection: V^T . inside^T as an A.B^T matmul (contract on d for
    # both operands).  Result is a lane-major (1, L) row -- no relayout needed
    # before the lane-axis softmax.
    scores = lax.dot_general(
        v_ref[...], inside,
        dimension_numbers=(((1,), (1,)), ((), ())),
        preferred_element_type=jnp.float32)                                # (1, L)

    # scores[mask] = -inf
    scores = jnp.where(mask_ref[0] != 0, -jnp.inf, scores)

    # Numerically-stable softmax over the lane (L) axis.
    m = jnp.max(scores, axis=-1, keepdims=True)
    e = jnp.exp(scores - m)
    denom = jnp.sum(e, axis=-1, keepdims=True)
    out_ref[0] = e * pl.reciprocal(denom, approx=True)                     # (1, L)


def attention_mechanism(st_1, c_j, mask, W_att, U_att, V_att):
    """st_1: (b,1,d) f32, c_j: (b,L,d) f32, mask: (b,L) bool -> attention (b,L) f32."""
    b, L, d = c_j.shape

    # Mask to int32, laid out (b, 1, L) to match the (1, L) score row in-kernel.
    mask_i32 = mask.astype(jnp.int32).reshape(b, 1, L)

    # V_att (d, 1) -> row vector (1, d) for the A.B^T score matmul.
    v_row = V_att.reshape(1, d)

    out = pl.pallas_call(
        attention_kernel,
        grid=(b,),
        out_shape=jax.ShapeDtypeStruct((b, 1, L), jnp.float32),
        in_specs=[
            pl.BlockSpec((1, 1, d), lambda i: (i, 0, 0)),   # st_1
            pl.BlockSpec((1, L, d), lambda i: (i, 0, 0)),   # c_j
            pl.BlockSpec((1, 1, L), lambda i: (i, 0, 0)),   # mask
            pl.BlockSpec((d, d), lambda i: (0, 0)),         # W_att (grid-invariant)
            pl.BlockSpec((d, d), lambda i: (0, 0)),         # U_att (grid-invariant)
            pl.BlockSpec((1, d), lambda i: (0, 0)),         # V_att row (grid-invariant)
        ],
        out_specs=pl.BlockSpec((1, 1, L), lambda i: (i, 0, 0)),
        compiler_params=pltpu.CompilerParams(
            dimension_semantics=("parallel",)),             # split batch across TCs
    )(st_1, c_j, mask_i32, W_att, U_att, v_row)

    return out[:, 0, :]                                     # (b, L)


if __name__ == "__main__":
    key = jax.random.PRNGKey(0)
    b, L, d = 2, 8, 32  # batch, seq length, hidden_dim

    k_v, k_u, k_w, k_s, k_c, k_m = jax.random.split(key, 6)

    # Deterministic parameter init mirroring torch.randn(...) * 0.1
    V_att = jax.random.normal(k_v, (d, 1), jnp.float32) * 0.1
    U_att = jax.random.normal(k_u, (d, d), jnp.float32) * 0.1
    W_att = jax.random.normal(k_w, (d, d), jnp.float32) * 0.1

    # Example inputs
    st_1 = jax.random.normal(k_s, (b, 1, d), jnp.float32)
    c_j = jax.random.normal(k_c, (b, L, d), jnp.float32)
    # Boolean mask (True => position masked out); keep at least one unmasked per row
    # (a fully-masked row yields NaN, matching torch softmax semantics).
    mask = jax.random.bernoulli(k_m, p=0.3, shape=(b, L))
    mask = mask.at[:, 0].set(False)

    attn = attention_mechanism(st_1, c_j, mask, W_att, U_att, V_att)
    attn = jax.block_until_ready(attn)

    # Lightweight sanity check against a pure-JAX reference.
    inside_ref = jnp.tanh(jnp.einsum("bld,de->ble", c_j, W_att)
                          + jnp.einsum("bod,de->boe", st_1, U_att))
    scores_ref = jnp.einsum("bld,do->bl", inside_ref, V_att)
    scores_ref = jnp.where(mask, -jnp.inf, scores_ref)
    attn_ref = jax.nn.softmax(scores_ref, axis=1)
    # Tolerance accounts for the EUP approximate reciprocal in the softmax denom.
    assert jnp.allclose(attn, attn_ref, atol=1e-3, rtol=1e-3), "mismatch vs reference"

    print("KERNEL_OK")
</pallas_src>

<mosaic_0001>
module attributes {stable_mosaic.version = 11 : i64} {
  func.func @attention_kernel(%arg0: i32, %arg1: memref<1x1x32xf32, #tpu.memory_space<vmem>>, %arg2: memref<1x8x32xf32, #tpu.memory_space<vmem>>, %arg3: memref<1x1x8xi32, #tpu.memory_space<vmem>>, %arg4: memref<32x32xf32, #tpu.memory_space<vmem>>, %arg5: memref<32x32xf32, #tpu.memory_space<vmem>>, %arg6: memref<1x32xf32, #tpu.memory_space<vmem>>, %arg7: memref<1x1x8xf32, #tpu.memory_space<vmem>>) attributes {dimension_semantics = [#tpu.dimension_semantics<parallel>], iteration_bounds = array<i64: 2>, scalar_prefetch = 0 : i64, scratch_operands = 0 : i64, tpu.core_type = #tpu.core_type<tc>, window_params = [{transform_indices = @transform_0, window_bounds = array<i64: 1, 1, 32>}, {transform_indices = @transform_1, window_bounds = array<i64: 1, 8, 32>}, {transform_indices = @transform_2, window_bounds = array<i64: 1, 1, 8>}, {pipeline_mode = #tpu.pipeline_mode<synchronous>, transform_indices = @transform_3, window_bounds = array<i64: 32, 32>}, {pipeline_mode = #tpu.pipeline_mode<synchronous>, transform_indices = @transform_4, window_bounds = array<i64: 32, 32>}, {pipeline_mode = #tpu.pipeline_mode<synchronous>, transform_indices = @transform_5, window_bounds = array<i64: 1, 32>}, {transform_indices = @transform_6, window_bounds = array<i64: 1, 1, 8>}]} {
    %c0 = arith.constant 0 : index
    %c0_0 = arith.constant 0 : index
    %c0_1 = arith.constant 0 : index
    %0 = vector.load %arg2[%c0, %c0_0, %c0_1] : memref<1x8x32xf32, #tpu.memory_space<vmem>>, vector<1x8x32xf32>
    %1 = vector.shape_cast %0 : vector<1x8x32xf32> to vector<8x32xf32>
    %c0_2 = arith.constant 0 : index
    %c0_3 = arith.constant 0 : index
    %c0_4 = arith.constant 0 : index
    %2 = vector.load %arg1[%c0_2, %c0_3, %c0_4] : memref<1x1x32xf32, #tpu.memory_space<vmem>>, vector<1x1x32xf32>
    %3 = vector.shape_cast %2 : vector<1x1x32xf32> to vector<1x32xf32>
    %c0_5 = arith.constant 0 : index
    %c0_6 = arith.constant 0 : index
    %4 = vector.load %arg4[%c0_5, %c0_6] : memref<32x32xf32, #tpu.memory_space<vmem>>, vector<32x32xf32>
    %cst = arith.constant dense<0.000000e+00> : vector<8x32xf32>
    %5 = tpu.matmul %1, %4, %cst {dimension_numbers = #tpu.dot_dimension_numbers<[1], [0], [0], [1], [0, 0, 1, 1], [], []>} : vector<8x32xf32>, vector<32x32xf32>, vector<8x32xf32> -> vector<8x32xf32>
    %c0_7 = arith.constant 0 : index
    %c0_8 = arith.constant 0 : index
    %6 = vector.load %arg5[%c0_7, %c0_8] : memref<32x32xf32, #tpu.memory_space<vmem>>, vector<32x32xf32>
    %cst_9 = arith.constant dense<0.000000e+00> : vector<1x32xf32>
    %7 = tpu.matmul %3, %6, %cst_9 {dimension_numbers = #tpu.dot_dimension_numbers<[1], [0], [0], [1], [0, 0, 1, 1], [], []>} : vector<1x32xf32>, vector<32x32xf32>, vector<1x32xf32> -> vector<1x32xf32>
    %8 = vector.broadcast %7 : vector<1x32xf32> to vector<8x32xf32>
    %9 = arith.addf %5, %8 : vector<8x32xf32>
    %10 = math.tanh %9 : vector<8x32xf32>
    %c0_10 = arith.constant 0 : index
    %c0_11 = arith.constant 0 : index
    %11 = vector.load %arg6[%c0_10, %c0_11] : memref<1x32xf32, #tpu.memory_space<vmem>>, vector<1x32xf32>
    %cst_12 = arith.constant dense<0.000000e+00> : vector<1x8xf32>
    %12 = tpu.matmul %11, %10, %cst_12 {dimension_numbers = #tpu.dot_dimension_numbers<[1], [1], [0], [0], [0, 0, 1, 0], [], []>} : vector<1x32xf32>, vector<8x32xf32>, vector<1x8xf32> -> vector<1x8xf32>
    %c0_13 = arith.constant 0 : index
    %c0_14 = arith.constant 0 : index
    %c0_15 = arith.constant 0 : index
    %13 = vector.load %arg3[%c0_13, %c0_14, %c0_15] : memref<1x1x8xi32, #tpu.memory_space<vmem>>, vector<1x1x8xi32>
    %14 = vector.shape_cast %13 : vector<1x1x8xi32> to vector<1x8xi32>
    %c0_i32 = arith.constant 0 : i32
    %15 = vector.broadcast %c0_i32 : i32 to vector<1x8xi32>
    %16 = arith.cmpi ne, %14, %15 : vector<1x8xi32>
    %cst_16 = arith.constant 0xFF800000 : f32
    %17 = vector.broadcast %cst_16 : f32 to vector<1x8xf32>
    %18 = arith.select %16, %17, %12 : vector<1x8xi1>, vector<1x8xf32>
    %cst_17 = arith.constant dense<0xFF800000> : vector<1xf32>
    %19 = vector.multi_reduction <maximumf>, %18, %cst_17 [1] : vector<1x8xf32> to vector<1xf32>
    %20 = vector.shape_cast %19 : vector<1xf32> to vector<1x1xf32>
    %21 = vector.broadcast %20 : vector<1x1xf32> to vector<1x8xf32>
    %22 = arith.subf %18, %21 : vector<1x8xf32>
    %23 = math.exp %22 : vector<1x8xf32>
    %cst_18 = arith.constant dense<0.000000e+00> : vector<1xf32>
    %24 = vector.multi_reduction <add>, %23, %cst_18 [1] : vector<1x8xf32> to vector<1xf32>
    %25 = vector.shape_cast %24 : vector<1xf32> to vector<1x1xf32>
    %26 = tpu.reciprocal %25 {approx = true} : vector<1x1xf32> -> vector<1x1xf32>
    %27 = vector.broadcast %26 : vector<1x1xf32> to vector<1x8xf32>
    %28 = arith.mulf %23, %27 : vector<1x8xf32>
    %c0_19 = arith.constant 0 : index
    %c0_20 = arith.constant 0 : index
    %c0_21 = arith.constant 0 : index
    %29 = vector.load %arg7[%c0_19, %c0_20, %c0_21] : memref<1x1x8xf32, #tpu.memory_space<vmem>>, vector<1x1x8xf32>
    %30 = vector.shape_cast %29 : vector<1x1x8xf32> to vector<1x8xf32>
    %31 = vector.shape_cast %28 : vector<1x8xf32> to vector<1x1x8xf32>
    tpu.vector_store %arg7[%c0_19, %c0_20, %c0_21], %31 {strides = array<i32>} : memref<1x1x8xf32, #tpu.memory_space<vmem>>, vector<1x1x8xf32>,
    return
  }
  func.func @transform_0(%arg0: i32) -> (i32, i32, i32) {
    %c0_i32 = arith.constant 0 : i32
    %c0_i32_0 = arith.constant 0 : i32
    %c0_i32_1 = arith.constant 0 : i32
    return %arg0, %c0_i32, %c0_i32_0 : i32, i32, i32
  }
  func.func @transform_1(%arg0: i32) -> (i32, i32, i32) {
    %c0_i32 = arith.constant 0 : i32
    %c0_i32_0 = arith.constant 0 : i32
    %c0_i32_1 = arith.constant 0 : i32
    return %arg0, %c0_i32, %c0_i32_0 : i32, i32, i32
  }
  func.func @transform_2(%arg0: i32) -> (i32, i32, i32) {
    %c0_i32 = arith.constant 0 : i32
    %c0_i32_0 = arith.constant 0 : i32
    %c0_i32_1 = arith.constant 0 : i32
    return %arg0, %c0_i32, %c0_i32_0 : i32, i32, i32
  }
  func.func @transform_3(%arg0: i32) -> (i32, i32) {
    %c0_i32 = arith.constant 0 : i32
    %c0_i32_0 = arith.constant 0 : i32
    %c0_i32_1 = arith.constant 0 : i32
    return %c0_i32, %c0_i32_0 : i32, i32
  }
  func.func @transform_4(%arg0: i32) -> (i32, i32) {
    %c0_i32 = arith.constant 0 : i32
    %c0_i32_0 = arith.constant 0 : i32
    %c0_i32_1 = arith.constant 0 : i32
    return %c0_i32, %c0_i32_0 : i32, i32
  }
  func.func @transform_5(%arg0: i32) -> (i32, i32) {
    %c0_i32 = arith.constant 0 : i32
    %c0_i32_0 = arith.constant 0 : i32
    %c0_i32_1 = arith.constant 0 : i32
    return %c0_i32, %c0_i32_0 : i32, i32
  }
  func.func @transform_6(%arg0: i32) -> (i32, i32, i32) {
    %c0_i32 = arith.constant 0 : i32
    %c0_i32_0 = arith.constant 0 : i32
    %c0_i32_1 = arith.constant 0 : i32
    return %arg0, %c0_i32, %c0_i32_0 : i32, i32, i32
  }
}

</mosaic_0001>

<bundles_post_ra>
// kernel: tpu_custom_call.1
= control target key start
LH: loop header
LB: loop body
LE: loop exit
PB: predicated region body
PF: predicated region fallthrough
CT: control target
= control target key end

     0   :  { %s1417_s0 = inlined_call_operand.hbm [shape: f32[2,1,32], index: 0, kind: input, shape index: {}]   ;;  %s1418_s1 = inlined_call_operand.hbm [shape: f32[2,8,32], index: 1, kind: input, shape index: {}]   ;;  %s1419_s2 = inlined_call_operand.vmem [shape: s32[2,1,8], index: 2, kind: input, shape index: {}]   ;;  %s1420_s3 = inlined_call_operand.hbm [shape: f32[32,32], index: 3, kind: input, shape index: {}]   ;;  %s1421_s4 = inlined_call_operand.hbm [shape: f32[32,32], index: 4, kind: input, shape index: {}]   ;;  %s1422_s5 = inlined_call_operand.vmem [shape: f32[1,32], index: 5, kind: input, shape index: {}]   ;;  %s1423_s6 = inlined_call_operand.hbm [shape: f32[2,1,8], index: 6, kind: output, shape index: {}]  }
   0x1   :  { %1428 = sst [smem:[#allocation16_spill]] %s1417_s0 }
   0x2   :  { %1429 = sst [smem:[#allocation17_spill]] %s1420_s3 }
   0x3   :  { %11 = vsyncpa [#allocation3], 0 }
   0x4   :  { %13 = vsyncpa [#allocation3 + $0x1], 0 }
   0x5   :  { %14 = vsyncpa [#allocation6], 0 }
   0x6   :  { %16 = vsyncpa [#allocation6 + $0x1], 0 }
   0x7   :  { %17 = vsyncpa [#allocation9], 0 }
   0x8   :  { %18 = vsyncpa [#allocation4], 0 }
   0x9   :  { %20 = vsyncpa [#allocation4 + $0x1], 0  ;;  %s1119_s21 = smov 0   ;;  %s1121_s22 = smov 0  }
   0xa   :  { %s1123_s23 = smov 0   ;;  %s1125_s24 = smov 0  }
   0xb LB: > { %s1140_s25 = sadd.s32 4294967295, %s1072_s24   ;;  %s725_s26 = sadd.s32 4294967294, %s1072_s24   ;;  %s1072_s24 = sphi %s1125_s24, %s1452_s24   ;;  %s1068_s23 = sphi %s1123_s23, %s1451_s23   ;;  %s1064_s22 = sphi %s1121_s22, %s1450_s22   ;;  %s1060_s21 = sphi %s1119_s21, %s1449_s21  }
   0xc   : > { %p46_p0 = scmp.ne.s32.totalorder %s1064_s22, %s1060_s21  ;;  %p1424_p1 = scmp.eq.s32.totalorder %s1140_s25, 0 }
   0xd   : > { %p191_p3 = scmp.eq.s32.totalorder %s725_s26, 1  ;;  %p726_p5 = scmp.ge.s32.totalorder %s1072_s24, 1 }
   0xe   : > { %p1149_p4 = por %p1424_p1, %p46_p0  ;;  %p198_p7 = scmp.lt.s32.totalorder %s1072_s24, 3 }
   0xf   : > { %p1154_p6 = por %p191_p3, %p46_p0  ;;  %s1074_s30 = smov [#allocation7]  }
  0x10   : > { %s1430_s27 = scalar_select %p1149_p4, 1, 0 }
  0x11   : > { %s1431_s28 = scalar_select %p1154_p6, 1, 0 }
  0x12   : > { %p1159_p8 = pnand %p726_p5, %p198_p7  ;;  %s210_s7 = sshll.u32 %s1074_s30, 4  ;;  %s1163_s7 = int_to_ptr.vmem [resolvable:$true] %s210_s7 }
  0x13   : > { %s1075_s9 = smov [#allocation8]   ;;  %s1434_s3 = sld [smem:[#allocation17_spill]] }
  0x14   : > { %s1432_s29 = scalar_select %p1159_p8, 1, 0 }
  0x15   : > { %p809_p9 = pneg %p1159_p8  ;;  %s223_s10 = sshll.u32 %s1075_s9, 4  ;;  %s1174_s10 = int_to_ptr.vmem [resolvable:$true] %s223_s10 }
  0x17   : > { %p1170_p11 = pnand %p809_p9, %p1424_p1 }
  0x19   : > { %s878_s13 = scalar_lea.hbm %s1434_s3, 512  ;;  %p880_p13 = pneg %p1170_p11 }
  0x1a   : > { %p879_p12 = scmp.ne.s32.totalorder %s1434_s3, %s878_s13  ;;  %p885_p5 = scmp.lt.u32.totalorder %s878_s13, %s1434_s3 }
  0x1c   : > { %p881_p0 = pnand %p880_p13, %p879_p12 }
  0x1e   : > { %p882_p3 = pneg %p881_p0 }
  0x20   : > { %p887_p7 = pnand %p885_p5, %p882_p3 }
  0x22   : > { %890 = shalt.err (!%p887_p7)
}
  0x23   : > { %s891_s18 = scalar_lea.vmem %s1163_s7, 512  ;;  %p899_p2 = scmp.lt.s32.totalorder %s1163_s7, %s1163_s7 }
  0x24   : > { %p892_p9 = scmp.ne.s32.totalorder %s1163_s7, %s891_s18  ;;  %p900_p12 = scmp.lt.s32.totalorder %s891_s18, %s891_s18 }
  0x26   : > { %p894_p10 = pnand %p892_p9, %p880_p13  ;;  %p901_p0 = por %p900_p12, %p899_p2 }
  0x28   : > { %p895_p1 = pneg %p894_p10 }
  0x2a   : > { %p902_p6 = pnand %p901_p0, %p895_p1 }
  0x2c   : > { %905 = shalt.err (!%p902_p6)
}
  0x2d   : > { %s1076_s19 = smov 128   ;;  %s1077_s20 = smov 8  }
  0x2e   : > { %812 = dma.hbm_to_vmem [thread:$0]  (!%p1170_p11), %s1434_s3, 512, %s1163_s7, [#allocation6], %s1076_s19, %s1076_s19, %s1077_s20  }
  0x2f   : > { %s906_s12 = scalar_lea.hbm %s1421_s4, 512 }
  0x30   : > { %p907_p2 = scmp.ne.s32.totalorder %s1421_s4, %s906_s12  ;;  %p913_p10 = scmp.lt.u32.totalorder %s906_s12, %s1421_s4 }
  0x32   : > { %p909_p1 = pnand %p907_p2, %p880_p13 }
  0x34   : > { %p910_p6 = pneg %p909_p1 }
  0x36   : > { %p915_p3 = pnand %p913_p10, %p910_p6 }
  0x38   : > { %918 = shalt.err (!%p915_p3)
}
  0x39   : > { %s919_s7 = scalar_lea.vmem %s1174_s10, 512  ;;  %p927_p12 = scmp.lt.s32.totalorder %s1174_s10, %s1174_s10 }
  0x3a   : > { %p920_p5 = scmp.ne.s32.totalorder %s1174_s10, %s919_s7  ;;  %p928_p0 = scmp.lt.s32.totalorder %s919_s7, %s919_s7 }
  0x3c   : > { %p922_p7 = pnand %p920_p5, %p880_p13  ;;  %p929_p2 = por %p928_p0, %p927_p12 }
  0x3e   : > { %p923_p9 = pneg %p922_p7 }
  0x40   : > { %p930_p1 = pnand %p929_p2, %p923_p9 }
  0x42   : > { %933 = shalt.err (!%p930_p1)
}
  0x43   : > { %815 = dma.hbm_to_vmem [thread:$0]  (!%p1170_p11), %s1421_s4, 512, %s1174_s10, [#allocation9], %s1076_s19, %s1076_s19, %s1077_s20  }
  0x44   : > { %s1229_s26 = sadd.s32 1, %s1072_s24   ;;  %s33_s8 = sadd.s32 1, %s1068_s23 }
  0x45   : > { %s30_s30 = ssub.s32 %s1072_s24, %s1229_s26  ;;  %p40_p13 = scmp.ne.s32.totalorder %s1068_s23, %s1064_s22 }
  0x46   : > { %p31_p6 = scmp.eq.s32.totalorder %s30_s30, 0  ;;  %p41_p10 = scmp.eq.s32.totalorder %s1072_s24, 0 }
  0x47   : > { %p1435_p3 = scmp.eq.s32.totalorder %s1140_s25, 1  ;;  %p829_p7 = scmp.lt.s32.totalorder %s1072_s24, 2 }
  0x48   : > { %s1245_s11 = scalar_select %p31_p6, %s1068_s23, %s33_s8  }
  0x49   : > { %p1239_p5 = por %p1435_p3, %p40_p13  ;;  %p42_p9 = por %p41_p10, %p40_p13 }
  0x4a   : > { %s1248_s12 = sand.u32 1, %s1068_s23   ;;  %s730_s10 = sshll.u32 %s1072_s24, 4 }
  0x4b   : > { %s1436_s9 = scalar_select %p1239_p5, 1, 0 }
  0x4c   : > { %s243_s19 = scalar_lea.vmem [#allocation2], %s1248_s12  ;;  %s1437_s0 = sld [smem:[#allocation16_spill]] }
  0x4d   : > { %s250_s20 = sshll.u32 %s243_s19, 4  ;;  %p1259_p11 = pnand %p829_p7, %p42_p9  ;;  %s1257_s20 = int_to_ptr.vmem [resolvable:$true] %s250_s20 }
  0x4e   : > { %s731_s17 = sshll.u32 %s1248_s12, 3  ;;  %s241_s18 = scalar_lea.sflag [#allocation3], %s1248_s12 }
  0x4f   : > { %p936_p0 = pneg %p1259_p11 }
  0x52   : > { %s1255_s15 = scalar_lea.hbm %s1437_s0, %s730_s10  ;;  %s939_s19 = scalar_lea.hbm %s1437_s0, 32 }
  0x53   : > { %s934_s8 = scalar_lea.hbm %s1255_s15, 16  ;;  %p940_p13 = scmp.lt.u32.totalorder %s1255_s15, %s1437_s0 }
  0x54   : > { %p935_p12 = scmp.ne.s32.totalorder %s1255_s15, %s934_s8  ;;  %p941_p6 = scmp.lt.u32.totalorder %s939_s19, %s934_s8 }
  0x55   : > { %p943_p3 = scmp.lt.u32.totalorder %s934_s8, %s1255_s15 }
  0x56   : > { %p937_p2 = pnand %p936_p0, %p935_p12  ;;  %p942_p10 = por %p941_p6, %p940_p13 }
  0x58   : > { %p938_p1 = pneg %p937_p2  ;;  %p944_p7 = por %p943_p3, %p942_p10 }
  0x5a   : > { %p945_p9 = pnand %p944_p7, %p938_p1 }
  0x5c   : > { %948 = shalt.err (!%p945_p9)
}
  0x5d   : > { %s949_s7 = scalar_lea.vmem %s1257_s20, 16  ;;  %s1078_s30 = smov [#allocation2]  }
  0x5e   : > { %p950_p12 = scmp.ne.s32.totalorder %s1257_s20, %s949_s7  ;;  %s954_s10 = sshll.u32 %s1078_s30, 4  ;;  %s955_s10 = int_to_ptr.vmem [resolvable:$false] %s954_s10 }
  0x5f   : > { %s956_s13 = scalar_lea.vmem %s955_s10, 32  ;;  %p957_p4 = scmp.lt.s32.totalorder %s1257_s20, %s955_s10 }
  0x60   : > { %p952_p2 = pnand %p950_p12, %p936_p0  ;;  %p958_p13 = scmp.lt.s32.totalorder %s956_s13, %s949_s7 }
  0x62   : > { %p953_p5 = pneg %p952_p2  ;;  %p959_p6 = por %p958_p13, %p957_p4 }
  0x64   : > { %p960_p10 = pnand %p959_p6, %p953_p5 }
  0x66   : > { %963 = shalt.err (!%p960_p10)
}
  0x67   : > { %819 = dma.hbm_to_vmem [thread:$0]  (!%p1259_p11), %s1255_s15, 16, %s1257_s20, %s241_s18  }
  0x68   : > { %s732_s8 = sshll.u32 %s1072_s24, 7  ;;  %s261_s19 = scalar_lea.vmem [#allocation5], %s731_s17 }
  0x69   : > { %s268_s14 = sshll.u32 %s261_s19, 4  ;;  %s1297_s7 = scalar_lea.hbm %s1418_s1, %s732_s8  ;;  %s269_s14 = int_to_ptr.vmem [resolvable:$true] %s268_s14 }
  0x6a   : > { %s1439_s10 = sand.u32 1, %s1072_s24   ;;  %s964_s3 = scalar_lea.hbm %s1297_s7, 128 }
  0x6b   : > { %s258_s13 = scalar_lea.sflag [#allocation6], %s1439_s10  ;;  %p965_p4 = scmp.ne.s32.totalorder %s1297_s7, %s964_s3 }
  0x6c   : > { %s969_s15 = scalar_lea.hbm %s1418_s1, 256  ;;  %p970_p3 = scmp.lt.u32.totalorder %s1297_s7, %s1418_s1 }
  0x6d   : > { %p967_p5 = pnand %p965_p4, %p936_p0  ;;  %p971_p7 = scmp.lt.u32.totalorder %s969_s15, %s964_s3 }
  0x6e   : > { %p973_p12 = scmp.lt.u32.totalorder %s964_s3, %s1297_s7 }
  0x6f   : > { %p968_p1 = pneg %p967_p5  ;;  %p972_p9 = por %p971_p7, %p970_p3 }
  0x71   : > { %p974_p2 = por %p973_p12, %p972_p9 }
  0x73   : > { %p975_p13 = pnand %p974_p2, %p968_p1 }
  0x75   : > { %978 = shalt.err (!%p975_p13)
}
  0x76   : > { %s979_s18 = scalar_lea.vmem %s269_s14, 128  ;;  %s1079_s8 = smov [#allocation5]  }
  0x77   : > { %p980_p6 = scmp.ne.s32.totalorder %s269_s14, %s979_s18  ;;  %s984_s19 = sshll.u32 %s1079_s8, 4  ;;  %s985_s19 = int_to_ptr.vmem [resolvable:$false] %s984_s19 }
  0x78   : > { %s986_s30 = scalar_lea.vmem %s985_s19, 256  ;;  %p987_p5 = scmp.lt.s32.totalorder %s269_s14, %s985_s19 }
  0x79   : > { %p982_p10 = pnand %p980_p6, %p936_p0  ;;  %p988_p8 = scmp.lt.s32.totalorder %s986_s30, %s979_s18 }
  0x7b   : > { %p983_p4 = pneg %p982_p10  ;;  %p989_p3 = por %p988_p8, %p987_p5 }
  0x7d   : > { %p990_p7 = pnand %p989_p3, %p983_p4 }
  0x7f   : > { %993 = shalt.err (!%p990_p7)
}
  0x80   : > { %822 = dma.hbm_to_vmem [thread:$0]  (!%p1259_p11), %s1297_s7, 128, %s269_s14, %s258_s13  }
  0x81   : > { %p1440_p1 = scmp.ne.s32.totalorder %s1432_s29, 0 }
  0x82   : > { %s1323_s3 = sand.u32 (!%p1440_p1), 1, %s1064_s22   ;;  %p1441_p0 = scmp.ne.s32.totalorder (!%p1440_p1), %s1430_s27, 0 }
  0x83   : > { %283 = sbr.rel (%p1440_p1) target bundleno = 929 (0x3a1), region = 44  ;;  %s286_s10 = scalar_lea.sflag (!%p1440_p1), [#allocation3], %s1323_s3 }
  0x84   : > { %s288_s12 = scalar_lea.vmem (!%p1440_p1), [#allocation2], %s1323_s3 }
  0x8a   : > { %1039 = dma.done.wait (%p1441_p0), %s286_s10, 16  }
  0x8b   : > { %1041 = vsyncadd (%p1441_p0), %s286_s10, 4294967280  ;;  %s293_s16 = sand.u32 1, %s1140_s25   ;;  %s734_s14 = sshll.u32 %s1323_s3, 3 }
  0x8c   : > { %s294_s29 = scalar_lea.sflag [#allocation6], %s293_s16  ;;  %s1333_s7 = scalar_lea.vmem [#allocation5], %s734_s14 }
  0x8d   : > { %1043 = dma.done.wait (%p1441_p0), %s294_s29, 128  }
  0x8e   : > { %1045 = vsyncadd (%p1441_p0), %s294_s29, 4294967168  ;;  %p1442_p8 = scmp.eq.s32.totalorder %s1140_s25, 0 }
  0x90   : > { %1047 = dma.done.wait (%p1442_p8), [#allocation6], 512   ;;  %p1443_p11 = pmov %p1442_p8 }
  0x91   : > { %p1444_p9 = pmov %p1442_p8 }
  0x92   : > { %1049 = vsyncadd (%p1443_p11), [#allocation6], 4294966784 }
  0x93   : > { %1051 = dma.done.wait (%p1444_p9), [#allocation9], 512   ;;  %p1445_p12 = pmov %p1442_p8 }
  0x94   : > { %v1080_v0 = vmov 0.0|0.0   ;;  %vm1081_vm0 = vmmov 0   ;;  %v1082_v1 = vmov 0.0   ;;  %v349_v2 = vld [vmem:[#allocation8] sm:$0xff]  ;;  %v350_v3 = vld [vmem:[#allocation8 + $0x8] sm:$0xff]  ;;  %v351_v7 = vld [vmem:[#allocation8 + $0x10] sm:$0xff]  ;;  %v427_v16 = vlaneseq }
  0x95   : > { %1053 = vsyncadd (%p1445_p12), [#allocation9], 4294966784  ;;  %783 = vmatprep.subr.bf16.mxu0 %v1080_v0  ;;  %789 = vmatprep.subr.bf16.mxu1 %v1080_v0  ;;  %v345_v4 = vld [vmem:[#allocation7] sm:$0xff]  ;;  %v784_v5 = vpack.c.bf16 %v350_v3, %v349_v2  ;;  %v346_v6 = vld [vmem:[#allocation7 + $0x8] sm:$0xff]  ;;  %vm353_vm1 = vcmask 261120   ;;  %p340_p2 = scmp.lt.s32.totalorder %s1140_s25, 1 }
  0x96   : > { %764 = vmatprep.mubr.msk.f32.mxu0 %vm1081_vm0, %v1082_v1  ;;  %775 = vmatprep.mubr.msk.f32.mxu1 %vm1081_vm0, %v1082_v1  ;;  %v352_v8 = vld [vmem:[#allocation8 + $0x18] sm:$0xff]  ;;  %v790_v9 = vpack.c.bf16 %v346_v6, %v345_v4  ;;  %v347_v10 = vld [vmem:[#allocation7 + $0x10] sm:$0xff]  ;;  %v344_v14 = vld [vmem:[%s288_s12] sm:$0x1]  ;;  %v428_v17 = vshrl.u32 %v427_v16, 7  ;;  %vm585_vm3 = vcmask 57344  }
  0x97   : > { %v348_v11 = vld [vmem:[#allocation7 + $0x18] sm:$0xff]  ;;  %785 = vmatpush3.bf16.msra.mxu0 %v784_v5  ;;  %v787_v12 = vpack.c.bf16 %v352_v8, %v351_v7  ;;  %v505_v26 = vld [vmem:[%s1422_s5] sm:$0x1]  ;;  %s341_s20 = scalar_select %p340_p2, %s1140_s25, 1 }
  0x98   : > { %791 = vmatpush3.bf16.msra.mxu1 %v790_v9  ;;  %786 = vmatprep.subr.bf16.mxu0 %v1080_v0  ;;  %v793_v13 = vpack.c.bf16 %v348_v11, %v347_v10  ;;  %v343_v15 = vld [vmem:[%s1333_s7] sm:$0xff]  ;;  %v429_v18 = vsub.s32 0, %v428_v17  ;;  %s741_s18 = sshll.u32 %s1140_s25, 4  ;;  %s339_s8 = scalar_lea.vmem [#allocation10], %s1323_s3 }
  0x99   : > { %792 = vmatprep.subr.bf16.mxu1 %v1080_v0  ;;  %s342_s17 = scalar_lea.vmem %s1419_s2, %s341_s20  ;;  %s611_s19 = sshll.u32 %s339_s8, 4  ;;  %s1374_s19 = int_to_ptr.vmem [resolvable:$true] %s611_s19 }
  0x9a   : > { %v582_v27 = vld [vmem:[%s342_s17] sm:$0x1]  ;;  %s1372_s12 = scalar_lea.hbm %s1423_s6, %s741_s18  ;;  %s599_s16 = scalar_lea.sflag [#allocation4], %s1323_s3 }
  0x9b   : > { %788 = vmatpush3.bf16.msra.mxu0 %v787_v12  ;;  %vm583_vm2 = vcmp.ne.s32.totalorder %v582_v27, 0  ;;  %s994_s14 = scalar_lea.vmem %s1374_s19, 16  ;;  %p1446_p6 = scmp.ne.s32.totalorder %s1436_s9, 0 }
  0x9c   : > { %794 = vmatpush3.bf16.msra.mxu1 %v793_v13  ;;  %778 = vmatprep.subr.mxu0 %v1082_v1  ;;  %p995_p13 = scmp.ne.s32.totalorder %s1374_s19, %s994_s14  ;;  %s1083_s25 = smov [#allocation10]  }
  0x9d   : > { %s998_s29 = sshll.u32 %s1083_s25, 4  ;;  %s999_s29 = int_to_ptr.vmem [resolvable:$false] %s998_s29 }
  0x9e   : > { %765 = vmatmul.mubr.msk.f32.vlgmr.msra.gmra.mrb[0].mxu0 %vm353_vm1, %v344_v14  ;;  %p996_p10 = pnand %p995_p13, %p1446_p6  ;;  %s1000_s7 = scalar_lea.vmem %s999_s29, 32 }
  0x9f   : > { %776 = vmatmul.mubr.msk.f32.vlgmr.msra.gmra.mrb[0].mxu1 %vm353_vm1, %v343_v15  ;;  %780 = vmatprep.mubr.msk.f32.mxu0 %vm1081_vm0, %v1082_v1  ;;  %p1001_p5 = scmp.lt.s32.totalorder %s1374_s19, %s999_s29  ;;  %p1002_p3 = scmp.lt.s32.totalorder %s1000_s7, %s994_s14 }
  0xa0   : > { %p997_p4 = pneg %p996_p10 }
  0xa1   : > { %p1003_p7 = por %p1002_p3, %p1001_p5 }
  0xa3   : > { %p1004_p1 = pnand %p1003_p7, %p997_p4 }
 0x171   : > { %v423_v19 = vpop.f32.mrb[0].mxu0 }
 0x172   : > { %v430_v20 = vrot.slane %v423_v19, %v429_v18  ;;  %v766_v21 = vpop.f32.mrb[1].mxu0  ;;  %v500_v22 = vpop.f32.mrb[0].mxu1 }
 0x173   : > { %v777_v23 = vpop.f32.mrb[1].mxu1 }
 0x174   : > { %v501_v24 = vadd.f32 %v500_v22, %v430_v20 }
 0x176   : > { %872 = vtanh.f32 %v501_v24 }
 0x180   : > { %v873_v25 = vpop.eup %872 }
 0x181   : > { %779 = vmatpush3.xpose.msk.msra.mxu0 %vm353_vm1, %v873_v25 }
 0x184   : > { %781 = vmatmul.mubr.msk.f32.vlgmr.msra.gmra.mrb[2].mxu0 %vm353_vm1, %v505_v26 }
 0x257   : > { %v578_v28 = vpop.f32.mrb[2].mxu0 }
 0x258   : > { %v584_v29 = vsel %vm583_vm2, -inf, %v578_v28  ;;  %v782_v30 = vpop.f32.mrb[3].mxu0 }
 0x259   : > { %v586_v31 = vsel %vm585_vm3, %v584_v29, -inf }
 0x25a   : > { %587 = vmax.xlane.f32.xlu0 %v586_v31 }
 0x2e7   : > { %v588_v32 = vpop.xlane.xlu0 %587 }
 0x2e8   : > { %v589_v33 = vsub.f32 %v584_v29, %v588_v32 }
 0x2ea   : > { %v590_v34 = vmul.f32 1.442695, %v589_v33 }
 0x2ec   : > { %874 = vpow2.f32 %v590_v34 }
 0x2f6   : > { %v875_v35 = vpop.eup %874 }
 0x2f7   : > { %v592_v36 = vsel %vm585_vm3, %v875_v35, 0.0 }
 0x2f8   : > { %593 = vadd.xlane.f32.xlu0 %v592_v36 }
 0x385   : > { %v594_v37 = vpop.xlane.xlu0 %593 }
 0x386   : > { %876 = vrcp.f32 %v594_v37 }
 0x390   : > { %v877_v38 = vpop.eup %876 }
 0x391   : > { %v596_v39 = vmul.f32 %v877_v38, %v875_v35 }
 0x393   : > { %597 = vst.msk [vmem:[%s339_s8] sm:$0x1] %vm585_vm3, %v596_v39 }
 0x394   : > { %1007 = shalt.err (!%p1004_p1)
}
 0x395   : > { %s1008_s3 = scalar_lea.hbm %s1372_s12, 16  ;;  %s1012_s20 = scalar_lea.hbm %s1423_s6, 32 }
 0x396   : > { %p1009_p0 = scmp.ne.s32.totalorder %s1372_s12, %s1008_s3  ;;  %p1013_p9 = scmp.lt.u32.totalorder %s1372_s12, %s1423_s6 }
 0x397   : > { %p1014_p12 = scmp.lt.u32.totalorder %s1012_s20, %s1008_s3  ;;  %p1016_p13 = scmp.lt.u32.totalorder %s1008_s3, %s1372_s12 }
 0x398   : > { %p1010_p8 = pnand %p1009_p0, %p1446_p6 }
 0x399   : > { %p1015_p2 = por %p1014_p12, %p1013_p9 }
 0x39a   : > { %p1011_p11 = pneg %p1010_p8 }
 0x39b   : > { %p1017_p10 = por %p1016_p13, %p1015_p2 }
 0x39d   : > { %p1018_p4 = pnand %p1017_p10, %p1011_p11 }
 0x39f   : > { %1021 = shalt.err (!%p1018_p4)
}
 0x3a0   : > { %807 = dma.vmem_to_hbm [thread:$0]  (%p1446_p6), %s1374_s19, 16, %s1372_s12, %s599_s16  }
 0x3a1 PF: > { %s623_s17 = sand.u32 1, %s1060_s21   ;;  %p1447_p5 = scmp.ne.s32.totalorder %s1431_s28, 0 }
 0x3a2   : > { %p1448_p3 = scmp.ge.s32.totalorder %s1072_s24, 2  ;;  %s624_s18 = scalar_lea.sflag [#allocation4], %s623_s17 }
 0x3a4   : > { %p824_p7 = pnand %p1448_p3, %p1447_p5 }
 0x3a6   : > { %1055 = dma.done.wait (!%p824_p7), %s624_s18, 16  }
 0x3a7   : > { %1057 = vsyncadd (!%p824_p7), %s624_s18, 4294967280  ;;  %p23_p1 = scmp.ge.s32.totalorder %s1229_s26, 4   ;;  %s1449_s21 = smov %s1064_s22 }
 0x3a8   : > { %s1450_s22 = smov %s1068_s23  ;;  %s1451_s23 = smov %s1245_s11 }
 0x3a9   : > { %s1452_s24 = smov %s1229_s26  ;;  %25 = sbr.rel (!%p23_p1) target bundleno = 11 (0xb), region = 113 }
 0x3b0   :  { %628 = vsyncpa [#allocation3], 1 }
 0x3b1   :  { %630 = vsyncpa [#allocation3 + $0x1], 1 }
 0x3b2   :  { %631 = vsyncpa [#allocation6], 1 }
 0x3b3   :  { %633 = vsyncpa [#allocation6 + $0x1], 1 }
 0x3b4   :  { %634 = vsyncpa [#allocation9], 1 }
 0x3b5   :  { %635 = vsyncpa [#allocation4], 1 }
 0x3b6   :  { %637 = vsyncpa [#allocation4 + $0x1], 1 }

</bundles_post_ra>
